<compile_context>
chip_gen: v7x
topology: tpu7x:2x2x1
jax: 0.10.0
libtpu: 0.0.40
codegen_flags: <defaults>
</compile_context>

<pallas_src>
import jax
import jax.numpy as jnp
from jax import lax
from jax.experimental import pallas as pl
from jax.experimental.pallas import tpu as pltpu


def _deconv_kernel(x_ref, w_ref, b_ref, o_ref):
    # x_ref: (1, C_in, TS)        TS = th*W spatial positions (whole input rows)
    # w_ref: (2, C_in, 2*C_out)   w_ref[ki, ci, kj*C_out + co] = W[ci, co, ki, kj]
    # b_ref: (1, 2*C_out)         bias tiled over kj
    # o_ref: (1, th, 2, W, 2*C_out)
    th = o_ref.shape[1]
    w_cols = o_ref.shape[3]
    x = x_ref[0]                      # (C_in, TS): C_in on sublane, spatial on lane
    b = b_ref[...]                    # (1, 2*C_out)
    dn = (((0,), (0,)), ((), ()))     # contract over C_in on both operands
    # One matmul per output-row parity ki: result has spatial on sublane and the
    # packed (kj, co) channel axis on lanes.
    r0 = lax.dot_general(x, w_ref[0], dn, preferred_element_type=jnp.float32)
    r1 = lax.dot_general(x, w_ref[1], dn, preferred_element_type=jnp.float32)
    r0 = (r0 + b).astype(o_ref.dtype).reshape(th, w_cols, -1)
    r1 = (r1 + b).astype(o_ref.dtype).reshape(th, w_cols, -1)
    # Fused 2x2 scatter: even output rows (ki=0) and odd output rows (ki=1) are
    # leading-dim slices of the output block -- no cross-lane work.
    o_ref[0, :, 0, :, :] = r0
    o_ref[0, :, 1, :, :] = r1


def _choose_tile_rows(N, H, W, target_ts=1024):
    """Pick th (input rows per grid step).

    Constraints: th divides H, and th*W (the x-block lane dim) is either a multiple
    of 128 or the full H*W extent.  Prefer the largest tile <= target_ts elements
    (per-grid-step overhead ~0.35us), but keep >= 2 total grid steps when possible
    so v7x's two TensorCores both get work.
    """
    cands = []
    for d in range(1, H + 1):
        if H % d:
            continue
        ts = d * W
        if ts == H * W or ts % 128 == 0:
            cands.append(d)
    small = [d for d in cands if d * W <= target_ts]
    th = max(small) if small else H
    if N * (H // th) < 2:
        alt = [d for d in small if N * (H // d) >= 2]
        if alt:
            th = max(alt)
    return th


def deconv_block(x_nchw, weight, bias, *, target_tile_spatial=1024):
    """ConvTranspose2d(k=2, s=2, p=0) forward.

    x_nchw : (N, C_in, H, W)
    weight : (C_in, C_out, 2, 2)   (PyTorch ConvTranspose2d weight layout)
    bias   : (C_out,)
    returns: (N, C_out, 2H, 2W)
    """
    N, C_in, H, W = x_nchw.shape
    C_out = weight.shape[1]
    th = _choose_tile_rows(N, H, W, target_tile_spatial)
    TS = th * W

    # Free (contiguous) reshape of the NCHW input: zero HBM traffic.
    x3 = x_nchw.reshape(N, C_in, H * W)
    # Weight repack (tiny, one-time): (C_in, C_out, 2, 2) -> (ki, C_in, kj, C_out)
    # -> (2, C_in, 2*C_out) with the last axis packed as kj*C_out + co.
    w_packed = jnp.transpose(weight, (2, 0, 3, 1)).reshape(2, C_in, 2 * C_out)
    # Bias replicated over kj, matching w_packed's lane packing.
    b2 = jnp.tile(bias, 2).reshape(1, 2 * C_out)

    itemsize = jnp.dtype(x_nchw.dtype).itemsize
    out_elems = N * H * 2 * W * 2 * C_out
    flops = 2 * N * H * W * C_in * 4 * C_out
    bytes_accessed = itemsize * (x3.size + w_packed.size + b2.size + out_elems)

    grid = (N, H // th)
    # NOTE: weight/bias have constant index_maps; they could be single-buffered
    # (pipeline_mode=pl.Buffered(1)) to save VMEM at very large channel counts.
    out5 = pl.pallas_call(
        _deconv_kernel,
        out_shape=jax.ShapeDtypeStruct((N, H, 2, W, 2 * C_out), x_nchw.dtype),
        grid=grid,
        in_specs=[
            pl.BlockSpec((1, C_in, TS), lambda n, i: (n, 0, i)),
            pl.BlockSpec((2, C_in, 2 * C_out), lambda n, i: (0, 0, 0)),
            pl.BlockSpec((1, 2 * C_out), lambda n, i: (0, 0)),
        ],
        out_specs=pl.BlockSpec((1, th, 2, W, 2 * C_out), lambda n, i: (n, i, 0, 0, 0)),
        compiler_params=pltpu.CompilerParams(
            dimension_semantics=("parallel", "parallel")),
        cost_estimate=pl.CostEstimate(
            flops=flops, transcendentals=0, bytes_accessed=bytes_accessed),
    )(x3, w_packed, b2)

    # (N, H, 2, W, 2*C_out) is byte-identical to NHWC (N, 2H, 2W, C_out): free reshape.
    y_nhwc = out5.reshape(N, 2 * H, 2 * W, C_out)
    # Single remaining layout op, only to honor the PyTorch NCHW return contract.
    return jnp.transpose(y_nhwc, (0, 3, 1, 2))


def _reference(x, w, b):
    # out[n, co, 2i+ki, 2j+kj] = sum_ci x[n,ci,i,j] * w[ci,co,ki,kj] + b[co]
    N, C_in, H, W = x.shape
    C_out = w.shape[1]
    y = jnp.einsum("ncij,cokl->noikjl", x, w).reshape(N, C_out, 2 * H, 2 * W)
    return y + b[None, :, None, None]


if __name__ == "__main__":
    key = jax.random.PRNGKey(0)
    k_x, k_w, k_b = jax.random.split(key, 3)

    N, C_in, H, W = 2, 4, 16, 16
    C_out = 8

    x = jax.random.normal(k_x, (N, C_in, H, W), dtype=jnp.float32)
    # Deterministic synthetic parameters (shapes per nn.ConvTranspose2d(C_in, C_out, 2, 2))
    fan = C_in * 2 * 2
    bound = 1.0 / (fan ** 0.5)
    weight = jax.random.uniform(k_w, (C_in, C_out, 2, 2), jnp.float32, -bound, bound)
    bias = jax.random.uniform(k_b, (C_out,), jnp.float32, -bound, bound)

    y = deconv_block(x, weight, bias)
    y = jax.block_until_ready(y)

    y_ref = _reference(x, weight, bias)
    assert y.shape == (N, C_out, 2 * H, 2 * W), y.shape
    err = float(jnp.max(jnp.abs(y - y_ref)))
    assert jnp.allclose(y, y_ref, atol=1e-5, rtol=1e-5), err

    print("KERNEL_OK")
</pallas_src>

<mosaic_0001>
module attributes {stable_mosaic.version = 11 : i64} {
  func.func @_deconv_kernel(%arg0: i32, %arg1: i32, %arg2: memref<1x4x256xf32, #tpu.memory_space<vmem>>, %arg3: memref<2x4x16xf32, #tpu.memory_space<vmem>>, %arg4: memref<1x16xf32, #tpu.memory_space<vmem>>, %arg5: memref<1x16x2x16x16xf32, #tpu.memory_space<vmem>>) attributes {dimension_semantics = [#tpu.dimension_semantics<parallel>, #tpu.dimension_semantics<parallel>], iteration_bounds = array<i64: 2, 1>, scalar_prefetch = 0 : i64, scratch_operands = 0 : i64, tpu.core_type = #tpu.core_type<tc>, window_params = [{transform_indices = @transform_0, window_bounds = array<i64: 1, 4, 256>}, {pipeline_mode = #tpu.pipeline_mode<synchronous>, transform_indices = @transform_1, window_bounds = array<i64: 2, 4, 16>}, {pipeline_mode = #tpu.pipeline_mode<synchronous>, transform_indices = @transform_2, window_bounds = array<i64: 1, 16>}, {transform_indices = @transform_3, window_bounds = array<i64: 1, 16, 2, 16, 16>}]} {
    %c0 = arith.constant 0 : index
    %c0_0 = arith.constant 0 : index
    %c0_1 = arith.constant 0 : index
    %0 = vector.load %arg2[%c0, %c0_0, %c0_1] : memref<1x4x256xf32, #tpu.memory_space<vmem>>, vector<1x4x256xf32>
    %1 = vector.shape_cast %0 : vector<1x4x256xf32> to vector<4x256xf32>
    %c0_2 = arith.constant 0 : index
    %c0_3 = arith.constant 0 : index
    %2 = vector.load %arg4[%c0_2, %c0_3] : memref<1x16xf32, #tpu.memory_space<vmem>>, vector<1x16xf32>
    %c0_4 = arith.constant 0 : index
    %c0_5 = arith.constant 0 : index
    %c0_6 = arith.constant 0 : index
    %3 = vector.load %arg3[%c0_4, %c0_5, %c0_6] : memref<2x4x16xf32, #tpu.memory_space<vmem>>, vector<1x4x16xf32>
    %4 = vector.shape_cast %3 : vector<1x4x16xf32> to vector<4x16xf32>
    %cst = arith.constant dense<0.000000e+00> : vector<256x16xf32>
    %5 = tpu.matmul %1, %4, %cst {dimension_numbers = #tpu.dot_dimension_numbers<[0], [0], [1], [1], [0, 1, 1, 1], [], []>} : vector<4x256xf32>, vector<4x16xf32>, vector<256x16xf32> -> vector<256x16xf32>
    %c1 = arith.constant 1 : index
    %c0_7 = arith.constant 0 : index
    %c0_8 = arith.constant 0 : index
    %6 = vector.load %arg3[%c1, %c0_7, %c0_8] : memref<2x4x16xf32, #tpu.memory_space<vmem>>, vector<1x4x16xf32>
    %7 = vector.shape_cast %6 : vector<1x4x16xf32> to vector<4x16xf32>
    %cst_9 = arith.constant dense<0.000000e+00> : vector<256x16xf32>
    %8 = tpu.matmul %1, %7, %cst_9 {dimension_numbers = #tpu.dot_dimension_numbers<[0], [0], [1], [1], [0, 1, 1, 1], [], []>} : vector<4x256xf32>, vector<4x16xf32>, vector<256x16xf32> -> vector<256x16xf32>
    %9 = vector.broadcast %2 : vector<1x16xf32> to vector<256x16xf32>
    %10 = arith.addf %5, %9 : vector<256x16xf32>
    %11 = vector.shape_cast %10 : vector<256x16xf32> to vector<16x16x16xf32>
    %12 = vector.broadcast %2 : vector<1x16xf32> to vector<256x16xf32>
    %13 = arith.addf %8, %12 : vector<256x16xf32>
    %14 = vector.shape_cast %13 : vector<256x16xf32> to vector<16x16x16xf32>
    %c0_10 = arith.constant 0 : index
    %c0_11 = arith.constant 0 : index
    %c0_12 = arith.constant 0 : index
    %c0_13 = arith.constant 0 : index
    %c0_14 = arith.constant 0 : index
    %15 = vector.load %arg5[%c0_10, %c0_11, %c0_12, %c0_13, %c0_14] : memref<1x16x2x16x16xf32, #tpu.memory_space<vmem>>, vector<1x16x1x16x16xf32>
    %16 = vector.shape_cast %15 : vector<1x16x1x16x16xf32> to vector<16x16x16xf32>
    %17 = vector.shape_cast %11 : vector<16x16x16xf32> to vector<1x16x1x16x16xf32>
    tpu.vector_store %arg5[%c0_10, %c0_11, %c0_12, %c0_13, %c0_14], %17 {strides = array<i32>} : memref<1x16x2x16x16xf32, #tpu.memory_space<vmem>>, vector<1x16x1x16x16xf32>,
    %c0_15 = arith.constant 0 : index
    %c0_16 = arith.constant 0 : index
    %c1_17 = arith.constant 1 : index
    %c0_18 = arith.constant 0 : index
    %c0_19 = arith.constant 0 : index
    %18 = vector.load %arg5[%c0_15, %c0_16, %c1_17, %c0_18, %c0_19] : memref<1x16x2x16x16xf32, #tpu.memory_space<vmem>>, vector<1x16x1x16x16xf32>
    %19 = vector.shape_cast %18 : vector<1x16x1x16x16xf32> to vector<16x16x16xf32>
    %20 = vector.shape_cast %14 : vector<16x16x16xf32> to vector<1x16x1x16x16xf32>
    tpu.vector_store %arg5[%c0_15, %c0_16, %c1_17, %c0_18, %c0_19], %20 {strides = array<i32>} : memref<1x16x2x16x16xf32, #tpu.memory_space<vmem>>, vector<1x16x1x16x16xf32>,
    return
  }
  func.func @transform_0(%arg0: i32, %arg1: i32) -> (i32, i32, i32) {
    %c0_i32 = arith.constant 0 : i32
    %c0_i32_0 = arith.constant 0 : i32
    return %arg0, %c0_i32, %arg1 : i32, i32, i32
  }
  func.func @transform_1(%arg0: i32, %arg1: i32) -> (i32, i32, i32) {
    %c0_i32 = arith.constant 0 : i32
    %c0_i32_0 = arith.constant 0 : i32
    %c0_i32_1 = arith.constant 0 : i32
    %c0_i32_2 = arith.constant 0 : i32
    return %c0_i32, %c0_i32_0, %c0_i32_1 : i32, i32, i32
  }
  func.func @transform_2(%arg0: i32, %arg1: i32) -> (i32, i32) {
    %c0_i32 = arith.constant 0 : i32
    %c0_i32_0 = arith.constant 0 : i32
    %c0_i32_1 = arith.constant 0 : i32
    return %c0_i32, %c0_i32_0 : i32, i32
  }
  func.func @transform_3(%arg0: i32, %arg1: i32) -> (i32, i32, i32, i32, i32) {
    %c0_i32 = arith.constant 0 : i32
    %c0_i32_0 = arith.constant 0 : i32
    %c0_i32_1 = arith.constant 0 : i32
    %c0_i32_2 = arith.constant 0 : i32
    return %arg0, %arg1, %c0_i32, %c0_i32_0, %c0_i32_1 : i32, i32, i32, i32, i32
  }
}

</mosaic_0001>

<bundles_post_ra>
// kernel: tpu_custom_call.1
= control target key start
LH: loop header
LB: loop body
LE: loop exit
PB: predicated region body
PF: predicated region fallthrough
CT: control target
= control target key end

     0   :  { %8 = vsyncpa [#allocation3], 0  ;;  %s2051_s0 = inlined_call_operand.hbm [shape: f32[2,4,256], index: 0, kind: input, shape index: {}]   ;;  %s2052_s1 = inlined_call_operand.hbm [shape: f32[2,4,16], index: 1, kind: input, shape index: {}]   ;;  %s2053_s2 = inlined_call_operand.vmem [shape: f32[1,16], index: 2, kind: input, shape index: {}]   ;;  %s2054_s3 = inlined_call_operand.hbm [shape: f32[2,16,2,16,16], index: 3, kind: output, shape index: {}]  }
   0x1   :  { %10 = vsyncpa [#allocation3 + $0x1], 0 }
   0x2   :  { %11 = vsyncpa [#allocation6], 0 }
   0x3   :  { %12 = vsyncpa [#allocation4], 0 }
   0x4   :  { %14 = vsyncpa [#allocation4 + $0x1], 0  ;;  %s1570_s12 = smov 0   ;;  %s1572_s13 = smov 0  }
   0x5   :  { %s1574_s14 = smov 0   ;;  %s1576_s15 = smov 0  }
   0x6   :  { %s1578_s16 = smov 0   ;;  %s1580_s17 = smov 0  }
   0x7 LB: > { %s1034_s18 = sadd.s32 4294967295, %s1541_s17   ;;  %s1035_s19 = sadd.s32 4294967294, %s1541_s17   ;;  %s1541_s17 = sphi %s1580_s17, %s20_s17   ;;  %s1537_s16 = sphi %s1578_s16, %s2078_s16   ;;  %s1533_s15 = sphi %s1576_s15, %s2077_s15   ;;  %s1529_s14 = sphi %s1574_s14, %s2076_s14   ;;  %s1525_s13 = sphi %s1572_s13, %s2075_s13   ;;  %s1521_s12 = sphi %s1570_s12, %s2074_s12  }
   0x8   : > { %p54_p0 = scmp.ne.s32.totalorder %s1525_s13, %s1521_s12  ;;  %p1604_p1 = scmp.eq.s32.totalorder %s1034_s18, 0 }
   0x9   : > { %p1608_p2 = scmp.eq.s32.totalorder %s1034_s18, 1  ;;  %p128_p3 = scmp.eq.s32.totalorder %s1035_s19, 1 }
   0xa   : > { %s2059_s20 = scalar_select %p1604_p1, 1, 0 }
   0xb   : > { %s2060_s21 = scalar_select %p1608_p2, 1, 0 }
   0xc   : > { %p1614_p4 = por %p1604_p1, %p54_p0  ;;  %p1036_p5 = scmp.ge.s32.totalorder %s1541_s17, 1 }
   0xd   : > { %p1619_p6 = por %p128_p3, %p54_p0  ;;  %p135_p7 = scmp.lt.s32.totalorder %s1541_s17, 3 }
   0xe   : > { %s2061_s22 = scalar_select %p1614_p4, 1, 0 }
   0xf   : > { %s2062_s23 = scalar_select %p1619_p6, 1, 0 }
  0x10   : > { %p1624_p8 = pnand %p1036_p5, %p135_p7  ;;  %s1543_s25 = smov [#allocation5]  }
  0x11   : > { %s147_s26 = sshll.u32 %s1543_s25, 4  ;;  %s32_s28 = sadd.s32 1, %s1537_s16  ;;  %s148_s26 = int_to_ptr.vmem [resolvable:$true] %s147_s26 }
  0x12   : > { %s2063_s24 = scalar_select %p1624_p8, 1, 0 }
  0x13   : > { %p1326_p9 = pneg %p1624_p8  ;;  %s1397_s4 = scalar_lea.hbm %s2052_s1, 128 }
  0x14   : > { %p1398_p12 = scmp.ne.s32.totalorder %s2052_s1, %s1397_s4  ;;  %p1404_p5 = scmp.lt.u32.totalorder %s1397_s4, %s2052_s1 }
  0x15   : > { %p1633_p11 = pnand %p1326_p9, %p1604_p1 }
  0x17   : > { %p1399_p13 = pneg %p1633_p11 }
  0x19   : > { %p1400_p0 = pnand %p1399_p13, %p1398_p12 }
  0x1b   : > { %p1401_p3 = pneg %p1400_p0 }
  0x1d   : > { %p1406_p7 = pnand %p1404_p5, %p1401_p3 }
  0x1f   : > { %1409 = shalt.err (!%p1406_p7)
}
  0x20   : > { %s1410_s9 = scalar_lea.vmem %s148_s26, 128  ;;  %p1418_p1 = scmp.lt.s32.totalorder %s148_s26, %s148_s26 }
  0x21   : > { %p1411_p9 = scmp.ne.s32.totalorder %s148_s26, %s1410_s9  ;;  %p1419_p4 = scmp.lt.s32.totalorder %s1410_s9, %s1410_s9 }
  0x23   : > { %p1413_p10 = pnand %p1411_p9, %p1399_p13  ;;  %p1420_p8 = por %p1419_p4, %p1418_p1 }
  0x25   : > { %p1414_p6 = pneg %p1413_p10 }
  0x27   : > { %p1421_p2 = pnand %p1420_p8, %p1414_p6 }
  0x29   : > { %1424 = shalt.err (!%p1421_p2)
}
  0x2a   : > { %s1544_s10 = smov 64   ;;  %s1545_s11 = smov 4  }
  0x2b   : > { %1329 = dma.hbm_to_vmem [thread:$0]  (!%p1633_p11), %s2052_s1, 128, %s148_s26, [#allocation6], %s1544_s10, %s1544_s10, %s1545_s11  }
  0x2c   : > { %p34_p1 = scmp.ge.s32.totalorder %s32_s28, 2  ;;  %s41_s25 = sadd.s32 1, %s1529_s14 }
  0x2d   : > { %p48_p2 = scmp.ne.s32.totalorder %s1529_s14, %s1525_s13  ;;  %p49_p4 = scmp.eq.s32.totalorder %s1541_s17, 0 }
  0x2e   : > { %s2080_s28 = smov (%p34_p1, %s32_s28), 0  ;;  %p2066_p8 = scmp.ne.s32.totalorder %s2060_s21, 0 }
  0x2f   : > { %p1660_p6 = por %p49_p4, %p48_p2  ;;  %s36_s27 = ssub.s32 %s1537_s16, %s2080_s28 }
  0x30   : > { %p1666_p10 = por %p2066_p8, %p48_p2  ;;  %p1339_p12 = scmp.lt.s32.totalorder %s1541_s17, 2 }
  0x31   : > { %p39_p11 = scmp.eq.s32.totalorder %s36_s27, 0  ;;  %s164_s26 = sand.u32 1, %s1529_s14  }
  0x32   : > { %s1039_s4 = sshll.u32 %s164_s26, 3  ;;  %s1150_s6 = sshll.u32 %s1537_s16, 7 }
  0x33   : > { %s1675_s5 = scalar_select %p39_p11, %s1529_s14, %s41_s25  }
  0x34   : > { %s1681_s9 = scalar_lea.hbm %s2051_s0, %s1150_s6  ;;  %s168_s21 = scalar_lea.vmem [#allocation2], %s1039_s4 }
  0x35   : > { %s178_s10 = sshll.u32 %s168_s21, 4  ;;  %p1687_p13 = pnand %p1339_p12, %p1660_p6  ;;  %s1683_s10 = int_to_ptr.vmem [resolvable:$true] %s178_s10 }
  0x36   : > { %s165_s18 = scalar_lea.sflag [#allocation3], %s164_s26  ;;  %s1425_s19 = scalar_lea.hbm %s1681_s9, 128 }
  0x37   : > { %p1426_p0 = scmp.ne.s32.totalorder %s1681_s9, %s1425_s19  ;;  %p1427_p3 = pneg %p1687_p13 }
  0x38   : > { %s1430_s4 = scalar_lea.hbm %s2051_s0, 256  ;;  %p1431_p9 = scmp.lt.u32.totalorder %s1681_s9, %s2051_s0 }
  0x39   : > { %p1428_p5 = pnand %p1427_p3, %p1426_p0  ;;  %p1432_p1 = scmp.lt.u32.totalorder %s1430_s4, %s1425_s19 }
  0x3a   : > { %p1434_p4 = scmp.lt.u32.totalorder %s1425_s19, %s1681_s9 }
  0x3b   : > { %p1429_p7 = pneg %p1428_p5  ;;  %p1433_p2 = por %p1432_p1, %p1431_p9 }
  0x3d   : > { %p1435_p6 = por %p1434_p4, %p1433_p2 }
  0x3f   : > { %p1436_p8 = pnand %p1435_p6, %p1429_p7 }
  0x41   : > { %1439 = shalt.err (!%p1436_p8)
}
  0x42   : > { %s1440_s26 = scalar_lea.vmem %s1683_s10, 128  ;;  %s1546_s7 = smov [#allocation2]  }
  0x43   : > { %p1441_p12 = scmp.ne.s32.totalorder %s1683_s10, %s1440_s26  ;;  %s1445_s8 = sshll.u32 %s1546_s7, 4  ;;  %s1446_s8 = int_to_ptr.vmem [resolvable:$false] %s1445_s8 }
  0x44   : > { %s1447_s21 = scalar_lea.vmem %s1446_s8, 256  ;;  %p1448_p5 = scmp.lt.s32.totalorder %s1683_s10, %s1446_s8 }
  0x45   : > { %p1443_p11 = pnand %p1441_p12, %p1427_p3  ;;  %p1449_p9 = scmp.lt.s32.totalorder %s1447_s21, %s1440_s26 }
  0x47   : > { %p1444_p0 = pneg %p1443_p11  ;;  %p1450_p1 = por %p1449_p9, %p1448_p5 }
  0x49   : > { %p1451_p2 = pnand %p1450_p1, %p1444_p0 }
  0x4b   : > { %1454 = shalt.err (!%p1451_p2)
}
  0x4c   : > { %1333 = dma.hbm_to_vmem [thread:$0]  (!%p1687_p13), %s1681_s9, 128, %s1683_s10, %s165_s18  }
  0x4d   : > { %p2069_p7 = scmp.ne.s32.totalorder %s2063_s24, 0 }
  0x4e   : > { %s1719_s19 = sand.u32 (!%p2069_p7), 1, %s1525_s13   ;;  %p2070_p3 = scmp.ne.s32.totalorder (!%p2069_p7), %s2061_s22, 0 }
  0x4f   : > { %187 = sbr.rel (%p2069_p7) target bundleno = 574 (0x23e), region = 32  ;;  %s1043_s25 = sshll.u32 (!%p2069_p7), %s1719_s19, 3 }
  0x50   : > { %s190_s27 = scalar_lea.sflag (!%p2069_p7), [#allocation3], %s1719_s19  ;;  %s193_s4 = scalar_lea.vmem (!%p2069_p7), [#allocation2], %s1043_s25 }
  0x56   : > { %1508 = dma.done.wait (%p2070_p3), %s190_s27, 128  }
  0x57   : > { %1510 = vsyncadd (%p2070_p3), %s190_s27, 4294967168  ;;  %p2071_p4 = scmp.ne.s32.totalorder %s2059_s20, 0 }
  0x59   : > { %1512 = dma.done.wait (%p2071_p4), [#allocation6], 128  }
  0x5a   : > { %1514 = vsyncadd (%p2071_p4), [#allocation6], 4294967168  ;;  %v222_v0 = vld [vmem:[%s193_s4] sm:$0xff]  ;;  %v224_v1 = vld [vmem:[#allocation5] sm:$0xf]  ;;  %vm397_vm0 = vcmask 1043456  }
  0x5b   : > { %236 = vxpose.xlu0.b32.start.end [1/1] (short) %v222_v0, 128  ;;  %v226_v2 = vld [vmem:[#allocation5 + $0x4] sm:$0xf]  ;;  %1218 = vmatprep.subr.msk.mxu0 %vm397_vm0, %v224_v1  ;;  %v234_v3 = vcombine.high %v222_v0, %v222_v0  ;;  %vm300_vm1 = vcmask 31744   ;;  %s1045_s20 = sshll.u32 %s1719_s19, 9  ;;  %v1799_v36 = vld [vmem:[%s2053_s2] ss:$0 sm:$0xff] }
  0x5c   : > { %1268 = vmatprep.subr.msk.mxu1 %vm397_vm0, %v226_v2  ;;  %1219 = vmatpush3.msk.msra.mxu0 %vm397_vm0, %v224_v1  ;;  %vm854_vm2 = vcmask 130048   ;;  %s1805_s9 = scalar_lea.vmem [#allocation7], %s1045_s20  ;;  %s1151_s10 = sshll.u32 %s1533_s15, 13 }
  0x5d   : > { %1269 = vmatpush3.msk.msra.mxu1 %vm397_vm0, %v226_v2  ;;  %s937_s11 = sshll.u32 %s1805_s9, 4  ;;  %s1990_s6 = scalar_lea.hbm %s2054_s3, %s1151_s10  ;;  %s1992_s11 = int_to_ptr.vmem [resolvable:$true] %s937_s11 }
  0x5e   : > { %s921_s15 = scalar_lea.sflag [#allocation4], %s1719_s19  ;;  %s1455_s26 = scalar_lea.vmem %s1992_s11, 8192 }
  0x5f   : > { %p1456_p13 = scmp.ne.s32.totalorder %s1992_s11, %s1455_s26  ;;  %s1547_s7 = smov [#allocation7]  }
  0x60   : > { %s1459_s8 = sshll.u32 %s1547_s7, 4  ;;  %s1460_s8 = int_to_ptr.vmem [resolvable:$false] %s1459_s8 }
  0x61   : > { %p1457_p6 = pnand %p1456_p13, %p1666_p10  ;;  %s1461_s21 = scalar_lea.vmem %s1460_s8, 16384 }
  0x62   : > { %p1462_p12 = scmp.lt.s32.totalorder %s1992_s11, %s1460_s8  ;;  %p1463_p11 = scmp.lt.s32.totalorder %s1461_s21, %s1455_s26 }
  0x63   : > { %p1458_p8 = pneg %p1457_p6 }
  0x64   : > { %p1464_p0 = por %p1463_p11, %p1462_p12 }
  0x66   : > { %p1465_p5 = pnand %p1464_p0, %p1458_p8 }
  0x98   : > { %268 = vxpose.xlu0.b32.start.end [1/1] (short) %v234_v3, 128 }
  0xdb   : > { %v252_v4 = vpop.trf.xlu0 }
  0xdc   : > { %1220 = vmatprep.mubr.msk.f32.mxu0 %vm300_vm1, %v252_v4  ;;  %1270 = vmatprep.mubr.msk.f32.mxu1 %vm300_vm1, %v252_v4 }
  0xdf   : > { %v253_v5 = vpop.trf.xlu0 }
  0xe0   : > { %1221 = vmatmul.mubr.msk.f32.vlgmr.msra.gmra.mrb[0].mxu0 %vm300_vm1, %v253_v5  ;;  %1271 = vmatmul.mubr.msk.f32.vlgmr.msra.gmra.mrb[0].mxu1 %vm300_vm1, %v253_v5 }
  0xe3   : > { %v254_v6 = vpop.trf.xlu0 }
  0xe4   : > { %1223 = vmatprep.mubr.msk.f32.mxu0 %vm300_vm1, %v254_v6  ;;  %1273 = vmatprep.mubr.msk.f32.mxu1 %vm300_vm1, %v254_v6 }
  0xe7   : > { %v255_v7 = vpop.trf.xlu0 }
  0xe8   : > { %1224 = vmatmul.mubr.msk.f32.gmra.mrb[2].mxu0 %vm300_vm1, %v255_v7  ;;  %1274 = vmatmul.mubr.msk.f32.gmra.mrb[2].mxu1 %vm300_vm1, %v255_v7 }
  0xeb   : > { %v256_v8 = vpop.trf.xlu0 }
  0xec   : > { %1226 = vmatprep.mubr.msk.f32.mxu0 %vm300_vm1, %v256_v8  ;;  %1276 = vmatprep.mubr.msk.f32.mxu1 %vm300_vm1, %v256_v8 }
  0xef   : > { %v257_v9 = vpop.trf.xlu0 }
  0xf0   : > { %1227 = vmatmul.mubr.msk.f32.gmra.mrb[4].mxu0 %vm300_vm1, %v257_v9  ;;  %1277 = vmatmul.mubr.msk.f32.gmra.mrb[4].mxu1 %vm300_vm1, %v257_v9 }
  0xf3   : > { %v258_v10 = vpop.trf.xlu0 }
  0xf4   : > { %1229 = vmatprep.mubr.msk.f32.mxu0 %vm300_vm1, %v258_v10  ;;  %1279 = vmatprep.mubr.msk.f32.mxu1 %vm300_vm1, %v258_v10 }
  0xf7   : > { %v259_v11 = vpop.trf.xlu0 }
  0xf8   : > { %1230 = vmatmul.mubr.msk.f32.gmra.mrb[6].mxu0 %vm300_vm1, %v259_v11  ;;  %1280 = vmatmul.mubr.msk.f32.gmra.mrb[6].mxu1 %vm300_vm1, %v259_v11 }
  0xfb   : > { %v260_v12 = vpop.trf.xlu0 }
  0xfc   : > { %1232 = vmatprep.mubr.msk.f32.mxu0 %vm300_vm1, %v260_v12  ;;  %1282 = vmatprep.mubr.msk.f32.mxu1 %vm300_vm1, %v260_v12 }
  0xff   : > { %v261_v13 = vpop.trf.xlu0 }
 0x100   : > { %1233 = vmatmul.mubr.msk.f32.gmra.mrb[8].mxu0 %vm300_vm1, %v261_v13  ;;  %1283 = vmatmul.mubr.msk.f32.gmra.mrb[8].mxu1 %vm300_vm1, %v261_v13 }
 0x103   : > { %v262_v14 = vpop.trf.xlu0 }
 0x104   : > { %1235 = vmatprep.mubr.msk.f32.mxu0 %vm300_vm1, %v262_v14  ;;  %1285 = vmatprep.mubr.msk.f32.mxu1 %vm300_vm1, %v262_v14 }
 0x107   : > { %v263_v15 = vpop.trf.xlu0 }
 0x108   : > { %1236 = vmatmul.mubr.msk.f32.gmra.mrb[10].mxu0 %vm300_vm1, %v263_v15  ;;  %1286 = vmatmul.mubr.msk.f32.gmra.mrb[10].mxu1 %vm300_vm1, %v263_v15 }
 0x10b   : > { %v264_v16 = vpop.trf.xlu0 }
 0x10c   : > { %1238 = vmatprep.mubr.msk.f32.mxu0 %vm300_vm1, %v264_v16  ;;  %1288 = vmatprep.mubr.msk.f32.mxu1 %vm300_vm1, %v264_v16 }
 0x10f   : > { %v265_v17 = vpop.trf.xlu0 }
 0x110   : > { %1239 = vmatmul.mubr.msk.f32.gmra.mrb[12].mxu0 %vm300_vm1, %v265_v17  ;;  %1289 = vmatmul.mubr.msk.f32.gmra.mrb[12].mxu1 %vm300_vm1, %v265_v17 }
 0x113   : > { %v266_v18 = vpop.trf.xlu0 }
 0x114   : > { %1241 = vmatprep.mubr.msk.f32.mxu0 %vm300_vm1, %v266_v18  ;;  %1291 = vmatprep.mubr.msk.f32.mxu1 %vm300_vm1, %v266_v18 }
 0x117   : > { %v267_v19 = vpop.trf.xlu0 }
 0x118   : > { %1242 = vmatmul.mubr.msk.f32.gmra.mrb[14].mxu0 %vm300_vm1, %v267_v19  ;;  %1292 = vmatmul.mubr.msk.f32.gmra.mrb[14].mxu1 %vm300_vm1, %v267_v19 }
 0x11b   : > { %v284_v20 = vpop.trf.xlu0 }
 0x11c   : > { %1244 = vmatprep.mubr.msk.f32.mxu0 %vm300_vm1, %v284_v20  ;;  %1294 = vmatprep.mubr.msk.f32.mxu1 %vm300_vm1, %v284_v20 }
 0x11f   : > { %v285_v21 = vpop.trf.xlu0 }
 0x120   : > { %1245 = vmatmul.mubr.msk.f32.gmra.mrb[16].mxu0 %vm300_vm1, %v285_v21  ;;  %1295 = vmatmul.mubr.msk.f32.gmra.mrb[16].mxu1 %vm300_vm1, %v285_v21 }
 0x123   : > { %v286_v22 = vpop.trf.xlu0 }
 0x124   : > { %1247 = vmatprep.mubr.msk.f32.mxu0 %vm300_vm1, %v286_v22  ;;  %1297 = vmatprep.mubr.msk.f32.mxu1 %vm300_vm1, %v286_v22 }
 0x127   : > { %v287_v23 = vpop.trf.xlu0 }
 0x128   : > { %1248 = vmatmul.mubr.msk.f32.gmra.mrb[18].mxu0 %vm300_vm1, %v287_v23  ;;  %1298 = vmatmul.mubr.msk.f32.gmra.mrb[18].mxu1 %vm300_vm1, %v287_v23 }
 0x12b   : > { %v288_v24 = vpop.trf.xlu0 }
 0x12c   : > { %1250 = vmatprep.mubr.msk.f32.mxu0 %vm300_vm1, %v288_v24  ;;  %1300 = vmatprep.mubr.msk.f32.mxu1 %vm300_vm1, %v288_v24 }
 0x12f   : > { %v289_v25 = vpop.trf.xlu0 }
 0x130   : > { %1251 = vmatmul.mubr.msk.f32.gmra.mrb[20].mxu0 %vm300_vm1, %v289_v25  ;;  %1301 = vmatmul.mubr.msk.f32.gmra.mrb[20].mxu1 %vm300_vm1, %v289_v25 }
 0x133   : > { %v290_v26 = vpop.trf.xlu0 }
 0x134   : > { %1253 = vmatprep.mubr.msk.f32.mxu0 %vm300_vm1, %v290_v26  ;;  %1303 = vmatprep.mubr.msk.f32.mxu1 %vm300_vm1, %v290_v26 }
 0x137   : > { %v291_v27 = vpop.trf.xlu0 }
 0x138   : > { %1254 = vmatmul.mubr.msk.f32.gmra.mrb[22].mxu0 %vm300_vm1, %v291_v27  ;;  %1304 = vmatmul.mubr.msk.f32.gmra.mrb[22].mxu1 %vm300_vm1, %v291_v27 }
 0x13b   : > { %v292_v28 = vpop.trf.xlu0 }
 0x13c   : > { %1256 = vmatprep.mubr.msk.f32.mxu0 %vm300_vm1, %v292_v28  ;;  %1306 = vmatprep.mubr.msk.f32.mxu1 %vm300_vm1, %v292_v28 }
 0x13f   : > { %v293_v29 = vpop.trf.xlu0 }
 0x140   : > { %1257 = vmatmul.mubr.msk.f32.gmra.mrb[24].mxu0 %vm300_vm1, %v293_v29  ;;  %1307 = vmatmul.mubr.msk.f32.gmra.mrb[24].mxu1 %vm300_vm1, %v293_v29 }
 0x143   : > { %v294_v30 = vpop.trf.xlu0 }
 0x144   : > { %1259 = vmatprep.mubr.msk.f32.mxu0 %vm300_vm1, %v294_v30  ;;  %1309 = vmatprep.mubr.msk.f32.mxu1 %vm300_vm1, %v294_v30 }
 0x147   : > { %v295_v31 = vpop.trf.xlu0 }
 0x148   : > { %1260 = vmatmul.mubr.msk.f32.gmra.mrb[26].mxu0 %vm300_vm1, %v295_v31  ;;  %1310 = vmatmul.mubr.msk.f32.gmra.mrb[26].mxu1 %vm300_vm1, %v295_v31 }
 0x14b   : > { %v296_v32 = vpop.trf.xlu0 }
 0x14c   : > { %1262 = vmatprep.mubr.msk.f32.mxu0 %vm300_vm1, %v296_v32  ;;  %1312 = vmatprep.mubr.msk.f32.mxu1 %vm300_vm1, %v296_v32 }
 0x14f   : > { %v297_v33 = vpop.trf.xlu0 }
 0x150   : > { %1263 = vmatmul.mubr.msk.f32.gmra.mrb[28].mxu0 %vm300_vm1, %v297_v33  ;;  %1313 = vmatmul.mubr.msk.f32.gmra.mrb[28].mxu1 %vm300_vm1, %v297_v33 }
 0x153   : > { %v298_v34 = vpop.trf.xlu0 }
 0x154   : > { %1265 = vmatprep.mubr.msk.f32.mxu0 %vm300_vm1, %v298_v34  ;;  %1315 = vmatprep.mubr.msk.f32.mxu1 %vm300_vm1, %v298_v34 }
 0x157   : > { %v299_v35 = vpop.trf.xlu0 }
 0x158   : > { %1266 = vmatmul.mubr.msk.f32.gmra.mrb[30].mxu0 %vm300_vm1, %v299_v35  ;;  %1316 = vmatmul.mubr.msk.f32.gmra.mrb[30].mxu1 %vm300_vm1, %v299_v35 }
 0x1b3   : > { %v1222_v37 = vpop.f32.mrb[0].mxu0  ;;  %v1272_v38 = vpop.f32.mrb[0].mxu1 }
 0x1b4   : > { %v473_v39 = vadd.f32 %v1222_v37, %v1799_v36  ;;  %v701_v40 = vadd.f32 %v1272_v38, %v1799_v36  ;;  %v467_v41 = vpop.f32.mrb[1].mxu0  ;;  %v695_v42 = vpop.f32.mrb[1].mxu1 }
 0x1b5   : > { %v468_v43 = vadd.f32 %v1799_v36, %v467_v41  ;;  %v696_v44 = vadd.f32 %v1799_v36, %v695_v42 }
 0x1b6   : > { %856 = vst.msk [vmem:[%s1805_s9 + $0x8] sm:$0xff] %vm854_vm2, %v473_v39  ;;  %1114 = vst.msk [vmem:[%s1805_s9 + $0x18] sm:$0xff] %vm854_vm2, %v701_v40 }
 0x1b7   : > { %855 = vst.msk [vmem:[%s1805_s9] sm:$0xff] %vm854_vm2, %v468_v43  ;;  %1113 = vst.msk [vmem:[%s1805_s9 + $0x10] sm:$0xff] %vm854_vm2, %v696_v44 }
 0x1bb   : > { %v1225_v45 = vpop.f32.mrb[2].mxu0  ;;  %v1275_v46 = vpop.f32.mrb[2].mxu1 }
 0x1bc   : > { %v483_v47 = vadd.f32 %v1225_v45, %v1799_v36  ;;  %v711_v48 = vadd.f32 %v1275_v46, %v1799_v36  ;;  %v477_v49 = vpop.f32.mrb[3].mxu0  ;;  %v705_v50 = vpop.f32.mrb[3].mxu1 }
 0x1bd   : > { %v478_v51 = vadd.f32 %v1799_v36, %v477_v49  ;;  %v706_v52 = vadd.f32 %v1799_v36, %v705_v50 }
 0x1be   : > { %858 = vst.msk [vmem:[%s1805_s9 + $0x28] sm:$0xff] %vm854_vm2, %v483_v47  ;;  %1116 = vst.msk [vmem:[%s1805_s9 + $0x38] sm:$0xff] %vm854_vm2, %v711_v48 }
 0x1bf   : > { %857 = vst.msk [vmem:[%s1805_s9 + $0x20] sm:$0xff] %vm854_vm2, %v478_v51  ;;  %1115 = vst.msk [vmem:[%s1805_s9 + $0x30] sm:$0xff] %vm854_vm2, %v706_v52 }
 0x1c3   : > { %v1228_v53 = vpop.f32.mrb[4].mxu0  ;;  %v1278_v54 = vpop.f32.mrb[4].mxu1 }
 0x1c4   : > { %v493_v55 = vadd.f32 %v1228_v53, %v1799_v36  ;;  %v721_v56 = vadd.f32 %v1278_v54, %v1799_v36  ;;  %v487_v57 = vpop.f32.mrb[5].mxu0  ;;  %v715_v58 = vpop.f32.mrb[5].mxu1 }
 0x1c5   : > { %v488_v59 = vadd.f32 %v1799_v36, %v487_v57  ;;  %v716_v60 = vadd.f32 %v1799_v36, %v715_v58 }
 0x1c6   : > { %860 = vst.msk [vmem:[%s1805_s9 + $0x48] sm:$0xff] %vm854_vm2, %v493_v55  ;;  %1118 = vst.msk [vmem:[%s1805_s9 + $0x58] sm:$0xff] %vm854_vm2, %v721_v56 }
 0x1c7   : > { %859 = vst.msk [vmem:[%s1805_s9 + $0x40] sm:$0xff] %vm854_vm2, %v488_v59  ;;  %1117 = vst.msk [vmem:[%s1805_s9 + $0x50] sm:$0xff] %vm854_vm2, %v716_v60 }
 0x1cb   : > { %v1231_v61 = vpop.f32.mrb[6].mxu0  ;;  %v1281_v62 = vpop.f32.mrb[6].mxu1 }
 0x1cc   : > { %v503_v63 = vadd.f32 %v1231_v61, %v1799_v36  ;;  %v731_v0 = vadd.f32 %v1281_v62, %v1799_v36  ;;  %v497_v1 = vpop.f32.mrb[7].mxu0  ;;  %v725_v2 = vpop.f32.mrb[7].mxu1 }
 0x1cd   : > { %v498_v3 = vadd.f32 %v1799_v36, %v497_v1  ;;  %v726_v4 = vadd.f32 %v1799_v36, %v725_v2 }
 0x1ce   : > { %862 = vst.msk [vmem:[%s1805_s9 + $0x68] sm:$0xff] %vm854_vm2, %v503_v63  ;;  %1120 = vst.msk [vmem:[%s1805_s9 + $0x78] sm:$0xff] %vm854_vm2, %v731_v0 }
 0x1cf   : > { %861 = vst.msk [vmem:[%s1805_s9 + $0x60] sm:$0xff] %vm854_vm2, %v498_v3  ;;  %1119 = vst.msk [vmem:[%s1805_s9 + $0x70] sm:$0xff] %vm854_vm2, %v726_v4 }
 0x1d3   : > { %v1234_v5 = vpop.f32.mrb[8].mxu0  ;;  %v1284_v6 = vpop.f32.mrb[8].mxu1 }
 0x1d4   : > { %v513_v7 = vadd.f32 %v1234_v5, %v1799_v36  ;;  %v741_v8 = vadd.f32 %v1284_v6, %v1799_v36  ;;  %v507_v9 = vpop.f32.mrb[9].mxu0  ;;  %v735_v10 = vpop.f32.mrb[9].mxu1 }
 0x1d5   : > { %v508_v11 = vadd.f32 %v1799_v36, %v507_v9  ;;  %v736_v12 = vadd.f32 %v1799_v36, %v735_v10 }
 0x1d6   : > { %864 = vst.msk [vmem:[%s1805_s9 + $0x88] sm:$0xff] %vm854_vm2, %v513_v7  ;;  %1122 = vst.msk [vmem:[%s1805_s9 + $0x98] sm:$0xff] %vm854_vm2, %v741_v8 }
 0x1d7   : > { %863 = vst.msk [vmem:[%s1805_s9 + $0x80] sm:$0xff] %vm854_vm2, %v508_v11  ;;  %1121 = vst.msk [vmem:[%s1805_s9 + $0x90] sm:$0xff] %vm854_vm2, %v736_v12 }
 0x1db   : > { %v1237_v13 = vpop.f32.mrb[10].mxu0  ;;  %v1287_v14 = vpop.f32.mrb[10].mxu1 }
 0x1dc   : > { %v523_v15 = vadd.f32 %v1237_v13, %v1799_v36  ;;  %v751_v16 = vadd.f32 %v1287_v14, %v1799_v36  ;;  %v517_v17 = vpop.f32.mrb[11].mxu0  ;;  %v745_v18 = vpop.f32.mrb[11].mxu1 }
 0x1dd   : > { %v518_v19 = vadd.f32 %v1799_v36, %v517_v17  ;;  %v746_v20 = vadd.f32 %v1799_v36, %v745_v18 }
 0x1de   : > { %866 = vst.msk [vmem:[%s1805_s9 + $0xa8] sm:$0xff] %vm854_vm2, %v523_v15  ;;  %1124 = vst.msk [vmem:[%s1805_s9 + $0xb8] sm:$0xff] %vm854_vm2, %v751_v16 }
 0x1df   : > { %865 = vst.msk [vmem:[%s1805_s9 + $0xa0] sm:$0xff] %vm854_vm2, %v518_v19  ;;  %1123 = vst.msk [vmem:[%s1805_s9 + $0xb0] sm:$0xff] %vm854_vm2, %v746_v20 }
 0x1e3   : > { %v1240_v21 = vpop.f32.mrb[12].mxu0  ;;  %v1290_v22 = vpop.f32.mrb[12].mxu1 }
 0x1e4   : > { %v533_v23 = vadd.f32 %v1240_v21, %v1799_v36  ;;  %v761_v24 = vadd.f32 %v1290_v22, %v1799_v36  ;;  %v527_v25 = vpop.f32.mrb[13].mxu0  ;;  %v755_v26 = vpop.f32.mrb[13].mxu1 }
 0x1e5   : > { %v528_v27 = vadd.f32 %v1799_v36, %v527_v25  ;;  %v756_v28 = vadd.f32 %v1799_v36, %v755_v26 }
 0x1e6   : > { %868 = vst.msk [vmem:[%s1805_s9 + $0xc8] sm:$0xff] %vm854_vm2, %v533_v23  ;;  %1126 = vst.msk [vmem:[%s1805_s9 + $0xd8] sm:$0xff] %vm854_vm2, %v761_v24 }
 0x1e7   : > { %867 = vst.msk [vmem:[%s1805_s9 + $0xc0] sm:$0xff] %vm854_vm2, %v528_v27  ;;  %1125 = vst.msk [vmem:[%s1805_s9 + $0xd0] sm:$0xff] %vm854_vm2, %v756_v28 }
 0x1eb   : > { %v1243_v29 = vpop.f32.mrb[14].mxu0  ;;  %v1293_v30 = vpop.f32.mrb[14].mxu1 }
 0x1ec   : > { %v543_v31 = vadd.f32 %v1243_v29, %v1799_v36  ;;  %v771_v32 = vadd.f32 %v1293_v30, %v1799_v36  ;;  %v537_v33 = vpop.f32.mrb[15].mxu0  ;;  %v765_v34 = vpop.f32.mrb[15].mxu1 }
 0x1ed   : > { %v538_v35 = vadd.f32 %v1799_v36, %v537_v33  ;;  %v766_v37 = vadd.f32 %v1799_v36, %v765_v34 }
 0x1ee   : > { %870 = vst.msk [vmem:[%s1805_s9 + $0xe8] sm:$0xff] %vm854_vm2, %v543_v31  ;;  %1128 = vst.msk [vmem:[%s1805_s9 + $0xf8] sm:$0xff] %vm854_vm2, %v771_v32 }
 0x1ef   : > { %869 = vst.msk [vmem:[%s1805_s9 + $0xe0] sm:$0xff] %vm854_vm2, %v538_v35  ;;  %1127 = vst.msk [vmem:[%s1805_s9 + $0xf0] sm:$0xff] %vm854_vm2, %v766_v37 }
 0x1f3   : > { %v1246_v38 = vpop.f32.mrb[16].mxu0  ;;  %v1296_v39 = vpop.f32.mrb[16].mxu1 }
 0x1f4   : > { %v553_v40 = vadd.f32 %v1246_v38, %v1799_v36  ;;  %v781_v41 = vadd.f32 %v1296_v39, %v1799_v36  ;;  %v547_v42 = vpop.f32.mrb[17].mxu0  ;;  %v775_v43 = vpop.f32.mrb[17].mxu1 }
 0x1f5   : > { %v548_v44 = vadd.f32 %v1799_v36, %v547_v42  ;;  %v776_v45 = vadd.f32 %v1799_v36, %v775_v43 }
 0x1f6   : > { %872 = vst.msk [vmem:[%s1805_s9 + $0x108] sm:$0xff] %vm854_vm2, %v553_v40  ;;  %1130 = vst.msk [vmem:[%s1805_s9 + $0x118] sm:$0xff] %vm854_vm2, %v781_v41 }
 0x1f7   : > { %871 = vst.msk [vmem:[%s1805_s9 + $0x100] sm:$0xff] %vm854_vm2, %v548_v44  ;;  %1129 = vst.msk [vmem:[%s1805_s9 + $0x110] sm:$0xff] %vm854_vm2, %v776_v45 }
 0x1fb   : > { %v1249_v46 = vpop.f32.mrb[18].mxu0  ;;  %v1299_v47 = vpop.f32.mrb[18].mxu1 }
 0x1fc   : > { %v563_v48 = vadd.f32 %v1249_v46, %v1799_v36  ;;  %v791_v49 = vadd.f32 %v1299_v47, %v1799_v36  ;;  %v557_v50 = vpop.f32.mrb[19].mxu0  ;;  %v785_v51 = vpop.f32.mrb[19].mxu1 }
 0x1fd   : > { %v558_v52 = vadd.f32 %v1799_v36, %v557_v50  ;;  %v786_v53 = vadd.f32 %v1799_v36, %v785_v51 }
 0x1fe   : > { %874 = vst.msk [vmem:[%s1805_s9 + $0x128] sm:$0xff] %vm854_vm2, %v563_v48  ;;  %1132 = vst.msk [vmem:[%s1805_s9 + $0x138] sm:$0xff] %vm854_vm2, %v791_v49 }
 0x1ff   : > { %873 = vst.msk [vmem:[%s1805_s9 + $0x120] sm:$0xff] %vm854_vm2, %v558_v52  ;;  %1131 = vst.msk [vmem:[%s1805_s9 + $0x130] sm:$0xff] %vm854_vm2, %v786_v53 }
 0x203   : > { %v1252_v54 = vpop.f32.mrb[20].mxu0  ;;  %v1302_v55 = vpop.f32.mrb[20].mxu1 }
 0x204   : > { %v573_v56 = vadd.f32 %v1252_v54, %v1799_v36  ;;  %v801_v57 = vadd.f32 %v1302_v55, %v1799_v36  ;;  %v567_v58 = vpop.f32.mrb[21].mxu0  ;;  %v795_v59 = vpop.f32.mrb[21].mxu1 }
 0x205   : > { %v568_v60 = vadd.f32 %v1799_v36, %v567_v58  ;;  %v796_v61 = vadd.f32 %v1799_v36, %v795_v59 }
 0x206   : > { %876 = vst.msk [vmem:[%s1805_s9 + $0x148] sm:$0xff] %vm854_vm2, %v573_v56  ;;  %1134 = vst.msk [vmem:[%s1805_s9 + $0x158] sm:$0xff] %vm854_vm2, %v801_v57 }
 0x207   : > { %875 = vst.msk [vmem:[%s1805_s9 + $0x140] sm:$0xff] %vm854_vm2, %v568_v60  ;;  %1133 = vst.msk [vmem:[%s1805_s9 + $0x150] sm:$0xff] %vm854_vm2, %v796_v61 }
 0x20b   : > { %v1255_v62 = vpop.f32.mrb[22].mxu0  ;;  %v1305_v63 = vpop.f32.mrb[22].mxu1 }
 0x20c   : > { %v583_v0 = vadd.f32 %v1255_v62, %v1799_v36  ;;  %v811_v1 = vadd.f32 %v1305_v63, %v1799_v36  ;;  %v577_v2 = vpop.f32.mrb[23].mxu0  ;;  %v805_v3 = vpop.f32.mrb[23].mxu1 }
 0x20d   : > { %v578_v4 = vadd.f32 %v1799_v36, %v577_v2  ;;  %v806_v5 = vadd.f32 %v1799_v36, %v805_v3 }
 0x20e   : > { %878 = vst.msk [vmem:[%s1805_s9 + $0x168] sm:$0xff] %vm854_vm2, %v583_v0  ;;  %1136 = vst.msk [vmem:[%s1805_s9 + $0x178] sm:$0xff] %vm854_vm2, %v811_v1 }
 0x20f   : > { %877 = vst.msk [vmem:[%s1805_s9 + $0x160] sm:$0xff] %vm854_vm2, %v578_v4  ;;  %1135 = vst.msk [vmem:[%s1805_s9 + $0x170] sm:$0xff] %vm854_vm2, %v806_v5 }
 0x213   : > { %v1258_v6 = vpop.f32.mrb[24].mxu0  ;;  %v1308_v7 = vpop.f32.mrb[24].mxu1 }
 0x214   : > { %v593_v8 = vadd.f32 %v1258_v6, %v1799_v36  ;;  %v821_v9 = vadd.f32 %v1308_v7, %v1799_v36  ;;  %v587_v10 = vpop.f32.mrb[25].mxu0  ;;  %v815_v11 = vpop.f32.mrb[25].mxu1 }
 0x215   : > { %v588_v12 = vadd.f32 %v1799_v36, %v587_v10  ;;  %v816_v13 = vadd.f32 %v1799_v36, %v815_v11 }
 0x216   : > { %880 = vst.msk [vmem:[%s1805_s9 + $0x188] sm:$0xff] %vm854_vm2, %v593_v8  ;;  %1138 = vst.msk [vmem:[%s1805_s9 + $0x198] sm:$0xff] %vm854_vm2, %v821_v9 }
 0x217   : > { %879 = vst.msk [vmem:[%s1805_s9 + $0x180] sm:$0xff] %vm854_vm2, %v588_v12  ;;  %1137 = vst.msk [vmem:[%s1805_s9 + $0x190] sm:$0xff] %vm854_vm2, %v816_v13 }
 0x21b   : > { %v1261_v14 = vpop.f32.mrb[26].mxu0  ;;  %v1311_v15 = vpop.f32.mrb[26].mxu1 }
 0x21c   : > { %v603_v16 = vadd.f32 %v1261_v14, %v1799_v36  ;;  %v831_v17 = vadd.f32 %v1311_v15, %v1799_v36  ;;  %v597_v18 = vpop.f32.mrb[27].mxu0  ;;  %v825_v19 = vpop.f32.mrb[27].mxu1 }
 0x21d   : > { %v598_v20 = vadd.f32 %v1799_v36, %v597_v18  ;;  %v826_v21 = vadd.f32 %v1799_v36, %v825_v19 }
 0x21e   : > { %882 = vst.msk [vmem:[%s1805_s9 + $0x1a8] sm:$0xff] %vm854_vm2, %v603_v16  ;;  %1140 = vst.msk [vmem:[%s1805_s9 + $0x1b8] sm:$0xff] %vm854_vm2, %v831_v17 }
 0x21f   : > { %881 = vst.msk [vmem:[%s1805_s9 + $0x1a0] sm:$0xff] %vm854_vm2, %v598_v20  ;;  %1139 = vst.msk [vmem:[%s1805_s9 + $0x1b0] sm:$0xff] %vm854_vm2, %v826_v21 }
 0x223   : > { %v1264_v22 = vpop.f32.mrb[28].mxu0  ;;  %v1314_v23 = vpop.f32.mrb[28].mxu1 }
 0x224   : > { %v613_v24 = vadd.f32 %v1264_v22, %v1799_v36  ;;  %v841_v25 = vadd.f32 %v1314_v23, %v1799_v36  ;;  %v607_v26 = vpop.f32.mrb[29].mxu0  ;;  %v835_v27 = vpop.f32.mrb[29].mxu1 }
 0x225   : > { %v608_v28 = vadd.f32 %v1799_v36, %v607_v26  ;;  %v836_v29 = vadd.f32 %v1799_v36, %v835_v27 }
 0x226   : > { %884 = vst.msk [vmem:[%s1805_s9 + $0x1c8] sm:$0xff] %vm854_vm2, %v613_v24  ;;  %1142 = vst.msk [vmem:[%s1805_s9 + $0x1d8] sm:$0xff] %vm854_vm2, %v841_v25 }
 0x227   : > { %883 = vst.msk [vmem:[%s1805_s9 + $0x1c0] sm:$0xff] %vm854_vm2, %v608_v28  ;;  %1141 = vst.msk [vmem:[%s1805_s9 + $0x1d0] sm:$0xff] %vm854_vm2, %v836_v29 }
 0x22b   : > { %v1267_v30 = vpop.f32.mrb[30].mxu0  ;;  %v1317_v31 = vpop.f32.mrb[30].mxu1 }
 0x22c   : > { %v623_v32 = vadd.f32 %v1267_v30, %v1799_v36  ;;  %v851_v33 = vadd.f32 %v1317_v31, %v1799_v36  ;;  %v617_v34 = vpop.f32.mrb[31].mxu0  ;;  %v845_v35 = vpop.f32.mrb[31].mxu1 }
 0x22d   : > { %v618_v37 = vadd.f32 %v1799_v36, %v617_v34  ;;  %v846_v38 = vadd.f32 %v1799_v36, %v845_v35 }
 0x22e   : > { %886 = vst.msk [vmem:[%s1805_s9 + $0x1e8] sm:$0xff] %vm854_vm2, %v623_v32  ;;  %1144 = vst.msk [vmem:[%s1805_s9 + $0x1f8] sm:$0xff] %vm854_vm2, %v851_v33 }
 0x22f   : > { %885 = vst.msk [vmem:[%s1805_s9 + $0x1e0] sm:$0xff] %vm854_vm2, %v618_v37  ;;  %1143 = vst.msk [vmem:[%s1805_s9 + $0x1f0] sm:$0xff] %vm854_vm2, %v846_v38 }
 0x230   : > { %1468 = shalt.err (!%p1465_p5)
}
 0x231   : > { %s1469_s25 = scalar_lea.hbm %s1990_s6, 8192  ;;  %s1473_s20 = scalar_lea.hbm %s2054_s3, 16384 }
 0x232   : > { %p1470_p9 = scmp.ne.s32.totalorder %s1990_s6, %s1469_s25  ;;  %p1474_p7 = scmp.lt.u32.totalorder %s1990_s6, %s2054_s3 }
 0x233   : > { %p1475_p3 = scmp.lt.u32.totalorder %s1473_s20, %s1469_s25  ;;  %p1477_p13 = scmp.lt.u32.totalorder %s1469_s25, %s1990_s6 }
 0x234   : > { %p1471_p1 = pnand %p1470_p9, %p1666_p10 }
 0x235   : > { %p1476_p4 = por %p1475_p3, %p1474_p7 }
 0x236   : > { %p1472_p2 = pneg %p1471_p1 }
 0x237   : > { %p1478_p6 = por %p1477_p13, %p1476_p4 }
 0x239   : > { %p1479_p8 = pnand %p1478_p6, %p1472_p2 }
 0x23b   : > { %1482 = shalt.err (!%p1479_p8)
}
 0x23c   : > { %s1548_s9 = smov 128   ;;  %s1549_s10 = smov 8  }
 0x23d   : > { %1324 = dma.vmem_to_hbm [thread:$0]  (%p1666_p10), %s1992_s11, 8192, %s1990_s6, %s921_s15, %s1548_s9, %s1548_s9, %s1549_s10  }
 0x23e PF: > { %s952_s18 = sand.u32 1, %s1521_s12   ;;  %p2072_p12 = scmp.ne.s32.totalorder %s2062_s23, 0 }
 0x23f   : > { %p2073_p11 = scmp.ge.s32.totalorder %s1541_s17, 2  ;;  %s953_s29 = scalar_lea.sflag [#allocation4], %s952_s18 }
 0x241   : > { %p1335_p0 = pnand %p2073_p11, %p2072_p12 }
 0x243   : > { %1516 = dma.done.wait (!%p1335_p0), %s953_s29, 8192  }
 0x244   : > { %1518 = vsyncadd (!%p1335_p0), %s953_s29, 4294959104  ;;  %s20_s17 = sadd.s32 1, %s1541_s17   ;;  %s2074_s12 = smov %s1525_s13 }
 0x245   : > { %p17_p5 = scmp.ge.s32.totalorder %s20_s17, 4   ;;  %s2075_s13 = smov %s1529_s14 }
 0x246   : > { %s2076_s14 = smov %s1675_s5  ;;  %s2077_s15 = smov %s1537_s16 }
 0x247   : > { %s2078_s16 = smov %s2080_s28  ;;  %19 = sbr.rel (!%p17_p5) target bundleno = 7 (0x7), region = 83 }
 0x24e   :  { %958 = vsyncpa [#allocation3], 1 }
 0x24f   :  { %960 = vsyncpa [#allocation3 + $0x1], 1 }
 0x250   :  { %961 = vsyncpa [#allocation6], 1 }
 0x251   :  { %962 = vsyncpa [#allocation4], 1 }
 0x252   :  { %964 = vsyncpa [#allocation4 + $0x1], 1 }

</bundles_post_ra>
